<compile_context>
chip_gen: v7x
topology: tpu7x:2x2x1
jax: 0.10.0
libtpu: 0.0.40
codegen_flags: <defaults>
</compile_context>

<pallas_src>
import jax
import jax.numpy as jnp
from jax.experimental import pallas as pl
from jax.experimental.pallas import tpu as pltpu

_N_FACTORS = 5  # fm_V has 5 rows in the PyTorch module


def _round_up(n, m):
    return ((n + m - 1) // m) * m


def fm_kernel(x_ref, vwt_ref, sv2_ref, lin_ref, diff_ref):
    """One batch tile.

    x_ref    : (TB, D) f32   batch tile
    vwt_ref  : (D, 8)  f32   [fc_w; fm_V; 0; 0]^T  (constant across tiles)
    sv2_ref  : (1, D)  f32   sum_f fm_V^2          (constant across tiles)
    lin_ref  : (TB, 1) f32   per-row linear term (pre-bias)
    diff_ref : (TB, 1) f32   per-row 0.5 * (i1_row - i2_row) partials
    """
    x = x_ref[...]                                                   # (TB, D)

    # One fused MXU projection: column 0 = fc weight, 1..5 = fm_V, 6..7 = 0.
    proj = jnp.dot(x, vwt_ref[...], preferred_element_type=jnp.float32)  # (TB, 8)
    lin = proj[:, 0:1]                                               # (TB, 1)

    # i1 per row: sum_f (x . v_f)^2   (columns 6..7 are exact zeros)
    inter = proj[:, 1:]                                              # (TB, 7)
    i1 = jnp.sum(inter * inter, axis=-1, keepdims=True)              # (TB, 1)

    # i2 per row via the column-sum identity:
    #   sum_f (x^2 . v_f^2) = sum_d x_d^2 * (sum_f v_fd^2)
    x2 = x * x
    i2 = jnp.sum(x2 * sv2_ref[...], axis=-1, keepdims=True)          # (TB, 1)

    lin_ref[...] = lin
    diff_ref[...] = 0.5 * (i1 - i2)   # difference-first (numerically safer)


def fm_net_forward(x, fc_w, fc_b, fm_v, *, block_b=2048):
    x = jnp.asarray(x, jnp.float32)
    fc_w = jnp.asarray(fc_w, jnp.float32)
    fm_v = jnp.asarray(fm_v, jnp.float32)
    fc_b = jnp.asarray(fc_b, jnp.float32)
    B, D = x.shape

    # --- batch tile: multiple of 8 sublanes, double-buffered x tile kept
    #     around ~4 MiB so it is safe even under v7x's smaller scoped VMEM ---
    tb_cap = max(8, (4 * 1024 * 1024) // max(2 * D * 4, 1))
    tb = max(8, (min(block_b, tb_cap) // 8) * 8)
    if B <= tb:
        tb = _round_up(max(B, 1), 8)
    bp = _round_up(B, tb)
    if bp != B:
        # zero rows are mathematically inert for every term below
        x = jnp.pad(x, ((0, bp - B), (0, 0)))

    # --- batch-invariant weight prep (hoisted out of the kernel) -----------
    vw = jnp.concatenate([fc_w, fm_v], axis=0)                 # (6, D)
    vw = jnp.pad(vw, ((0, 8 - vw.shape[0]), (0, 0)))           # (8, D), rows 6,7 = 0
    vwt = vw.T                                                 # (D, 8), pre-transposed
    sv2 = jnp.sum(fm_v * fm_v, axis=0, keepdims=True)          # (1, D)

    grid = (bp // tb,)
    lin, diff = pl.pallas_call(
        fm_kernel,
        out_shape=(
            jax.ShapeDtypeStruct((bp, 1), jnp.float32),
            jax.ShapeDtypeStruct((bp, 1), jnp.float32),
        ),
        grid_spec=pltpu.PrefetchScalarGridSpec(
            num_scalar_prefetch=0,
            grid=grid,
            in_specs=[
                pl.BlockSpec((tb, D), lambda i: (i, 0)),   # x tile
                pl.BlockSpec((D, 8), lambda i: (0, 0)),    # Vw^T (constant block)
                pl.BlockSpec((1, D), lambda i: (0, 0)),    # sum_f V^2 (constant block)
            ],
            out_specs=(
                pl.BlockSpec((tb, 1), lambda i: (i, 0)),   # per-row linear
                pl.BlockSpec((tb, 1), lambda i: (i, 0)),   # per-row 0.5*(i1-i2)
            ),
        ),
        compiler_params=pltpu.CompilerParams(
            dimension_semantics=("parallel",),
        ),
    )(x, vwt, sv2)

    # --- phase 2 (plain XLA): batch-global scalar reduce + broadcast add ---
    total = jnp.sum(diff)                 # padded rows contribute exactly 0.0
    return lin[:B] + (fc_b.reshape(1, 1) + total)


def init_params(key, dim):
    """Deterministic init mirroring FM_net.init_weight()."""
    k_w, k_b, k_v = jax.random.split(key, 3)
    # xavier_uniform_ for fc.weight of shape (1, dim): bound = sqrt(6 / (dim + 1))
    bound = (6.0 / (dim + 1)) ** 0.5
    fc_w = jax.random.uniform(k_w, (1, dim), jnp.float32, minval=-bound, maxval=bound)
    # uniform_(a=0, b=1) for fc.bias
    fc_b = jax.random.uniform(k_b, (1,), jnp.float32, minval=0.0, maxval=1.0)
    # uniform_() for fm_V (5, dim)
    fm_v = jax.random.uniform(k_v, (_N_FACTORS, dim), jnp.float32, minval=0.0, maxval=1.0)
    return fc_w, fc_b, fm_v


def fm_net_reference(x, fc_w, fc_b, fm_v):
    """Pure-JAX reference of the PyTorch forward."""
    linear = x @ fc_w.T + fc_b                       # (B, 1)
    i1 = (x @ fm_v.T) ** 2
    i2 = (x ** 2) @ (fm_v ** 2).T
    return 0.5 * jnp.sum(i1 - i2) + linear


if __name__ == "__main__":
    key = jax.random.PRNGKey(0)
    dim = 32
    batch = 8

    k_x, k_p = jax.random.split(key)
    x = jax.random.normal(k_x, (batch, dim), jnp.float32)
    fc_w, fc_b, fm_v = init_params(k_p, dim)

    out = fm_net_forward(x, fc_w, fc_b, fm_v)
    out = jax.block_until_ready(out)
    ref = fm_net_reference(x, fc_w, fc_b, fm_v)
    assert out.shape == (batch, 1)
    assert jnp.allclose(out, ref, rtol=1e-4, atol=1e-4), (out, ref)

    # Exercise the multi-tile grid path (3 tiles, batch not a tile multiple).
    x2 = jax.random.normal(jax.random.PRNGKey(1), (21, dim), jnp.float32)
    out2 = jax.block_until_ready(fm_net_forward(x2, fc_w, fc_b, fm_v, block_b=8))
    ref2 = fm_net_reference(x2, fc_w, fc_b, fm_v)
    assert out2.shape == (21, 1)
    assert jnp.allclose(out2, ref2, rtol=1e-4, atol=1e-4), (out2, ref2)

    print("KERNEL_OK")
</pallas_src>

<mosaic_0001>
module attributes {stable_mosaic.version = 11 : i64} {
  func.func @fm_kernel(%arg0: i32, %arg1: memref<8x32xf32, #tpu.memory_space<vmem>>, %arg2: memref<32x8xf32, #tpu.memory_space<vmem>>, %arg3: memref<1x32xf32, #tpu.memory_space<vmem>>, %arg4: memref<8x1xf32, #tpu.memory_space<vmem>>, %arg5: memref<8x1xf32, #tpu.memory_space<vmem>>) attributes {dimension_semantics = [#tpu.dimension_semantics<parallel>], iteration_bounds = array<i64: 1>, scalar_prefetch = 0 : i64, scratch_operands = 0 : i64, tpu.core_type = #tpu.core_type<tc>, window_params = [{transform_indices = @transform_0, window_bounds = array<i64: 8, 32>}, {pipeline_mode = #tpu.pipeline_mode<synchronous>, transform_indices = @transform_1, window_bounds = array<i64: 32, 8>}, {pipeline_mode = #tpu.pipeline_mode<synchronous>, transform_indices = @transform_2, window_bounds = array<i64: 1, 32>}, {transform_indices = @transform_3, window_bounds = array<i64: 8, 1>}, {transform_indices = @transform_4, window_bounds = array<i64: 8, 1>}]} {
    %c0 = arith.constant 0 : index
    %c0_0 = arith.constant 0 : index
    %0 = vector.load %arg1[%c0, %c0_0] : memref<8x32xf32, #tpu.memory_space<vmem>>, vector<8x32xf32>
    %c0_1 = arith.constant 0 : index
    %c0_2 = arith.constant 0 : index
    %1 = vector.load %arg2[%c0_1, %c0_2] : memref<32x8xf32, #tpu.memory_space<vmem>>, vector<32x8xf32>
    %cst = arith.constant dense<0.000000e+00> : vector<8x8xf32>
    %2 = tpu.matmul %0, %1, %cst {dimension_numbers = #tpu.dot_dimension_numbers<[1], [0], [0], [1], [0, 0, 1, 1], [], []>} : vector<8x32xf32>, vector<32x8xf32>, vector<8x8xf32> -> vector<8x8xf32>
    %3 = vector.extract_strided_slice %2 {offsets = [0, 0], sizes = [8, 1], strides = [1, 1]} : vector<8x8xf32> to vector<8x1xf32>
    %4 = vector.extract_strided_slice %2 {offsets = [0, 1], sizes = [8, 7], strides = [1, 1]} : vector<8x8xf32> to vector<8x7xf32>
    %5 = arith.mulf %4, %4 : vector<8x7xf32>
    %cst_3 = arith.constant dense<0.000000e+00> : vector<8xf32>
    %6 = vector.multi_reduction <add>, %5, %cst_3 [1] : vector<8x7xf32> to vector<8xf32>
    %7 = vector.shape_cast %6 : vector<8xf32> to vector<8x1xf32>
    %8 = arith.mulf %0, %0 : vector<8x32xf32>
    %c0_4 = arith.constant 0 : index
    %c0_5 = arith.constant 0 : index
    %9 = vector.load %arg3[%c0_4, %c0_5] : memref<1x32xf32, #tpu.memory_space<vmem>>, vector<1x32xf32>
    %10 = vector.broadcast %9 : vector<1x32xf32> to vector<8x32xf32>
    %11 = arith.mulf %8, %10 : vector<8x32xf32>
    %cst_6 = arith.constant dense<0.000000e+00> : vector<8xf32>
    %12 = vector.multi_reduction <add>, %11, %cst_6 [1] : vector<8x32xf32> to vector<8xf32>
    %13 = vector.shape_cast %12 : vector<8xf32> to vector<8x1xf32>
    %c0_7 = arith.constant 0 : index
    %c0_8 = arith.constant 0 : index
    %14 = vector.load %arg4[%c0_7, %c0_8] : memref<8x1xf32, #tpu.memory_space<vmem>>, vector<8x1xf32>
    tpu.vector_store %arg4[%c0_7, %c0_8], %3 {strides = array<i32>} : memref<8x1xf32, #tpu.memory_space<vmem>>, vector<8x1xf32>,
    %15 = arith.subf %7, %13 : vector<8x1xf32>
    %cst_9 = arith.constant 5.000000e-01 : f32
    %16 = vector.broadcast %cst_9 : f32 to vector<8x1xf32>
    %17 = arith.mulf %16, %15 : vector<8x1xf32>
    %c0_10 = arith.constant 0 : index
    %c0_11 = arith.constant 0 : index
    %18 = vector.load %arg5[%c0_10, %c0_11] : memref<8x1xf32, #tpu.memory_space<vmem>>, vector<8x1xf32>
    tpu.vector_store %arg5[%c0_10, %c0_11], %17 {strides = array<i32>} : memref<8x1xf32, #tpu.memory_space<vmem>>, vector<8x1xf32>,
    return
  }
  func.func @transform_0(%arg0: i32) -> (i32, i32) {
    %c0_i32 = arith.constant 0 : i32
    %c0_i32_0 = arith.constant 0 : i32
    return %arg0, %c0_i32 : i32, i32
  }
  func.func @transform_1(%arg0: i32) -> (i32, i32) {
    %c0_i32 = arith.constant 0 : i32
    %c0_i32_0 = arith.constant 0 : i32
    %c0_i32_1 = arith.constant 0 : i32
    return %c0_i32, %c0_i32_0 : i32, i32
  }
  func.func @transform_2(%arg0: i32) -> (i32, i32) {
    %c0_i32 = arith.constant 0 : i32
    %c0_i32_0 = arith.constant 0 : i32
    %c0_i32_1 = arith.constant 0 : i32
    return %c0_i32, %c0_i32_0 : i32, i32
  }
  func.func @transform_3(%arg0: i32) -> (i32, i32) {
    %c0_i32 = arith.constant 0 : i32
    %c0_i32_0 = arith.constant 0 : i32
    return %arg0, %c0_i32 : i32, i32
  }
  func.func @transform_4(%arg0: i32) -> (i32, i32) {
    %c0_i32 = arith.constant 0 : i32
    %c0_i32_0 = arith.constant 0 : i32
    return %arg0, %c0_i32 : i32, i32
  }
}

</mosaic_0001>

<bundles_post_ra>
// kernel: tpu_custom_call.1
= control target key start
LH: loop header
LB: loop body
LE: loop exit
PB: predicated region body
PF: predicated region fallthrough
CT: control target
= control target key end

     0   :  { %v157_v0 = vmov 0.0|0.0   ;;  %vm158_vm0 = vmmov 0   ;;  %v159_v4 = vmov 0.0   ;;  %vm21_vm1 = vcmask 261120   ;;  %s212_s1 = inlined_call_operand.vmem [shape: f32[32,8], index: 1, kind: input, shape index: {}]   ;;  %s213_s0 = inlined_call_operand.vmem [shape: f32[8,32], index: 0, kind: input, shape index: {}]   ;;  %s214_s2 = inlined_call_operand.vmem [shape: f32[1,32], index: 2, kind: input, shape index: {}]   ;;  %s215_s3 = inlined_call_operand.vmem [shape: f32[8,1], index: 3, kind: output, shape index: {0}]   ;;  %s216_s4 = inlined_call_operand.vmem [shape: f32[8,1], index: 4, kind: output, shape index: {1}]  }
   0x1   :  { %147 = vmatprep.subr.bf16.mxu0 %v157_v0  ;;  %v17_v1 = vld [vmem:[%s212_s1] sm:$0xff]  ;;  %v18_v2 = vld [vmem:[%s212_s1 + $0x8] sm:$0xff]  ;;  %v19_v3 = vld [vmem:[%s212_s1 + $0x10] sm:$0xff]  ;;  %144 = vmatprep.mubr.msk.f32.mxu0 %vm158_vm0, %v159_v4  ;;  %vm116_vm2 = vcmask 7168   ;;  %vm100_vm3 = vcmask 56320  }
   0x2   :  { %v148_v5 = vpack.c.bf16 %v18_v2, %v17_v1  ;;  %v20_v6 = vld [vmem:[%s212_s1 + $0x18] sm:$0xff]  ;;  %v16_v8 = vld [vmem:[%s213_s0] sm:$0xff]  ;;  %s160_s0 = smov 127  }
   0x3   :  { %v151_v7 = vpack.c.bf16 %v20_v6, %v19_v3  ;;  %v104_v9 = vmul.f32 %v16_v8, %v16_v8  ;;  %v130_v10 = vld [vmem:[%s214_s2] ss:$0 sm:$0xff] }
   0x4   :  { %149 = vmatpush3.bf16.msra.mxu0 %v148_v5 }
   0x5   :  { %150 = vmatprep.subr.bf16.mxu0 %v157_v0  ;;  %v112_v11 = vmul.f32 %v130_v10, %v104_v9 }
   0x7   :  { %v113_v12 = vsel %vm21_vm1, %v112_v11, 0.0 }
   0x8   :  { %152 = vmatpush3.bf16.msra.mxu0 %v151_v7  ;;  %114 = vadd.xlane.f32.xlu1 %v113_v12 }
   0xb   :  { %145 = vmatmul.mubr.msk.f32.vlgmr.msra.gmra.mrb[0].mxu0 %vm21_vm1, %v16_v8 }
  0x95   :  { %v115_v18 = vpop.xlane.xlu1 %114 }
  0xde   :  { %v91_v13 = vpop.f32.mrb[0].mxu0 }
  0xdf   :  { %117 = vst.msk [vmem:[%s215_s3] sm:$0xff] %vm116_vm2, %v91_v13  ;;  %v146_v14 = vpop.f32.mrb[1].mxu0  ;;  %v95_v15 = vmul.f32 %v91_v13, %v91_v13 }
  0xe1   :  { %97 = vrot.lane.b32.xlu0 %v95_v15, %s160_s0 }
 0x153   :  { %v98_v16 = vpop.permute.xlu0 %97 }
 0x154   :  { %v101_v17 = vsel %vm100_vm3, %v98_v16, 0.0 }
 0x155   :  { %102 = vadd.xlane.f32.xlu0 %v101_v17 }
 0x1e2   :  { %v103_v19 = vpop.xlane.xlu0 %102 }
 0x1e3   :  { %v118_v20 = vsub.f32 %v103_v19, %v115_v18 }
 0x1e5   :  { %v119_v21 = vmul.f32 0.5, %v118_v20 }
 0x1e7   :  { %120 = vst.msk [vmem:[%s216_s4] sm:$0xff] %vm116_vm2, %v119_v21 }

</bundles_post_ra>
